<compile_context>
chip_gen: v7x
topology: tpu7x:2x2x1
jax: 0.10.0
libtpu: 0.0.40
codegen_flags: <defaults>
</compile_context>

<pallas_src>
import math

import jax
import jax.numpy as jnp
from jax.experimental import pallas as pl
from jax.experimental.pallas import tpu as pltpu


def _color_attention_kernel(x_ref, w1_ref, w2_ref, o_ref):
    # x_ref:  (C, T)   channels-first tile of pixels (T pixels on the lane axis)
    # w1_ref: (Cr, C)  first 1x1 conv weight, native PyTorch layout
    # w2_ref: (3, Cr)  second 1x1 conv weight, native PyTorch layout
    # o_ref:  (3, T)   lane-dense output tile
    h = jnp.dot(w1_ref[...], x_ref[...], preferred_element_type=jnp.float32)
    h = jnp.maximum(h, 0.0)                                     # ReLU
    y = jnp.dot(w2_ref[...], h, preferred_element_type=jnp.float32)
    o_ref[...] = (jax.nn.sigmoid(y) * 2.0).astype(o_ref.dtype)  # Sigmoid * 2.0


def color_attention_pallas(x_nchw, w0, w2, *, max_tile_pixels=2048):
    """Forward pass of ColorAttention.

    Args:
      x_nchw: (B, C, H, W) float32 input (PyTorch NCHW convention).
      w0: (C//8, C, 1, 1) first conv weight.
      w2: (3, C//8, 1, 1) second conv weight.
    Returns:
      (B, 3, H, W) float32 output.
    """
    B, C, H, W = x_nchw.shape
    Cr = w0.shape[0]
    HW = H * W

    # Free "glue": collapse trailing spatial dims, slice the 1x1 kernels.
    # No transposes anywhere — the kernel consumes the NCHW layout directly.
    x_flat = x_nchw.reshape(B, C, HW)     # (B, C, HW), contiguous view
    w1_mat = w0[:, :, 0, 0]               # (Cr, C)
    w2_mat = w2[:, :, 0, 0]               # (3, Cr)

    # Pixel tile: lane-dense (multiple of 128) and as large as possible while
    # keeping the double-buffered input block comfortably inside VMEM on all
    # generations (v7x has only 64 MiB physical / 32 MiB default scoped VMEM).
    if HW % 128 == 0:
        vmem_cap = 16 * 1024 * 1024                      # budget for 2x x-tile
        tile = (vmem_cap // (2 * C * 4) // 128) * 128
        tile = max(128, min(max_tile_pixels, tile))
        tile = min(tile, HW)
    else:
        # Ragged spatial size: last block dim must equal the full extent.
        tile = HW
    n_tiles = pl.cdiv(HW, tile)

    out = pl.pallas_call(
        _color_attention_kernel,
        out_shape=jax.ShapeDtypeStruct((B, 3, HW), jnp.float32),
        grid_spec=pltpu.PrefetchScalarGridSpec(
            num_scalar_prefetch=0,
            grid=(B, n_tiles),
            in_specs=[
                # batch dim squeezed out of the kernel view via None
                pl.BlockSpec((None, C, tile), lambda b, i: (b, 0, i)),
                pl.BlockSpec((Cr, C), lambda b, i: (0, 0)),
                pl.BlockSpec((3, Cr), lambda b, i: (0, 0)),
            ],
            out_specs=pl.BlockSpec((None, 3, tile), lambda b, i: (b, 0, i)),
        ),
        compiler_params=pltpu.CompilerParams(
            dimension_semantics=("parallel", "parallel")),
    )(x_flat, w1_mat, w2_mat)

    return out.reshape(B, 3, H, W)        # still NCHW; reshape is free


def init_params(key, channels):
    """Deterministic kaiming_normal_ init matching the PyTorch module."""
    reduction = 8
    cr = channels // reduction
    k0, k2 = jax.random.split(key)

    # conv[0]: kaiming_normal_(mode='fan_out', nonlinearity='relu')
    # fan_out = out_channels * kh * kw = cr, gain = sqrt(2)
    std0 = math.sqrt(2.0) / math.sqrt(cr * 1 * 1)
    w0 = std0 * jax.random.normal(k0, (cr, channels, 1, 1), dtype=jnp.float32)

    # conv[2]: kaiming_normal_(mode='fan_out', nonlinearity='sigmoid')
    # fan_out = 3, gain(sigmoid) = 1
    std2 = 1.0 / math.sqrt(3 * 1 * 1)
    w2 = std2 * jax.random.normal(k2, (3, cr, 1, 1), dtype=jnp.float32)
    return w0, w2


def _reference(x_nchw, w0, w2):
    """Pure-JAX reference of the PyTorch forward (for sanity check)."""
    h = jnp.maximum(jnp.einsum('rc,bchw->brhw', w0[:, :, 0, 0], x_nchw), 0.0)
    return jax.nn.sigmoid(jnp.einsum('or,brhw->bohw', w2[:, :, 0, 0], h)) * 2.0


if __name__ == "__main__":
    key = jax.random.PRNGKey(0)
    k_x, k_p = jax.random.split(key)

    B, C, H, W = 2, 32, 16, 16          # channels must be divisible by 8
    x = jax.random.normal(k_x, (B, C, H, W), dtype=jnp.float32)
    w0, w2 = init_params(k_p, C)

    out = color_attention_pallas(x, w0, w2)
    out = jax.block_until_ready(out)

    ref = jax.block_until_ready(_reference(x, w0, w2))
    assert out.shape == (B, 3, H, W)
    assert jnp.allclose(out, ref, atol=1e-5, rtol=1e-5)

    print("KERNEL_OK")
</pallas_src>

<mosaic_0001>
module attributes {stable_mosaic.version = 11 : i64} {
  func.func @_color_attention_kernel(%arg0: i32, %arg1: i32, %arg2: memref<1x32x256xf32, #tpu.memory_space<vmem>>, %arg3: memref<4x32xf32, #tpu.memory_space<vmem>>, %arg4: memref<3x4xf32, #tpu.memory_space<vmem>>, %arg5: memref<1x3x256xf32, #tpu.memory_space<vmem>>) attributes {dimension_semantics = [#tpu.dimension_semantics<parallel>, #tpu.dimension_semantics<parallel>], iteration_bounds = array<i64: 2, 1>, scalar_prefetch = 0 : i64, scratch_operands = 0 : i64, tpu.core_type = #tpu.core_type<tc>, window_params = [{transform_indices = @transform_0, window_bounds = array<i64: 1, 32, 256>}, {pipeline_mode = #tpu.pipeline_mode<synchronous>, transform_indices = @transform_1, window_bounds = array<i64: 4, 32>}, {pipeline_mode = #tpu.pipeline_mode<synchronous>, transform_indices = @transform_2, window_bounds = array<i64: 3, 4>}, {transform_indices = @transform_3, window_bounds = array<i64: 1, 3, 256>}]} {
    %c0 = arith.constant 0 : index
    %c0_0 = arith.constant 0 : index
    %0 = vector.load %arg3[%c0, %c0_0] : memref<4x32xf32, #tpu.memory_space<vmem>>, vector<4x32xf32>
    %c0_1 = arith.constant 0 : index
    %c0_2 = arith.constant 0 : index
    %c0_3 = arith.constant 0 : index
    %1 = vector.load %arg2[%c0_1, %c0_2, %c0_3] : memref<1x32x256xf32, #tpu.memory_space<vmem>>, vector<1x32x256xf32>
    %2 = vector.shape_cast %1 : vector<1x32x256xf32> to vector<32x256xf32>
    %cst = arith.constant dense<0.000000e+00> : vector<4x256xf32>
    %3 = tpu.matmul %0, %2, %cst {dimension_numbers = #tpu.dot_dimension_numbers<[1], [0], [0], [1], [0, 0, 1, 1], [], []>} : vector<4x32xf32>, vector<32x256xf32>, vector<4x256xf32> -> vector<4x256xf32>
    %cst_4 = arith.constant 0.000000e+00 : f32
    %4 = vector.broadcast %cst_4 : f32 to vector<4x256xf32>
    %5 = arith.maximumf %3, %4 : vector<4x256xf32>
    %c0_5 = arith.constant 0 : index
    %c0_6 = arith.constant 0 : index
    %6 = vector.load %arg4[%c0_5, %c0_6] : memref<3x4xf32, #tpu.memory_space<vmem>>, vector<3x4xf32>
    %cst_7 = arith.constant dense<0.000000e+00> : vector<3x256xf32>
    %7 = tpu.matmul %6, %5, %cst_7 {dimension_numbers = #tpu.dot_dimension_numbers<[1], [0], [0], [1], [0, 0, 1, 1], [], []>} : vector<3x4xf32>, vector<4x256xf32>, vector<3x256xf32> -> vector<3x256xf32>
    %8 = arith.negf %7 : vector<3x256xf32>
    %9 = math.exp %8 : vector<3x256xf32>
    %cst_8 = arith.constant 1.000000e+00 : f32
    %10 = vector.broadcast %cst_8 : f32 to vector<3x256xf32>
    %11 = arith.addf %10, %9 : vector<3x256xf32>
    %12 = arith.divf %10, %11 : vector<3x256xf32>
    %cst_9 = arith.constant 2.000000e+00 : f32
    %13 = vector.broadcast %cst_9 : f32 to vector<3x256xf32>
    %14 = arith.mulf %12, %13 : vector<3x256xf32>
    %c0_10 = arith.constant 0 : index
    %c0_11 = arith.constant 0 : index
    %c0_12 = arith.constant 0 : index
    %15 = vector.load %arg5[%c0_10, %c0_11, %c0_12] : memref<1x3x256xf32, #tpu.memory_space<vmem>>, vector<1x3x256xf32>
    %16 = vector.shape_cast %15 : vector<1x3x256xf32> to vector<3x256xf32>
    %17 = vector.shape_cast %14 : vector<3x256xf32> to vector<1x3x256xf32>
    tpu.vector_store %arg5[%c0_10, %c0_11, %c0_12], %17 {strides = array<i32>} : memref<1x3x256xf32, #tpu.memory_space<vmem>>, vector<1x3x256xf32>,
    return
  }
  func.func @transform_0(%arg0: i32, %arg1: i32) -> (i32, i32, i32) {
    %c0_i32 = arith.constant 0 : i32
    %c0_i32_0 = arith.constant 0 : i32
    return %arg0, %c0_i32, %arg1 : i32, i32, i32
  }
  func.func @transform_1(%arg0: i32, %arg1: i32) -> (i32, i32) {
    %c0_i32 = arith.constant 0 : i32
    %c0_i32_0 = arith.constant 0 : i32
    %c0_i32_1 = arith.constant 0 : i32
    return %c0_i32, %c0_i32_0 : i32, i32
  }
  func.func @transform_2(%arg0: i32, %arg1: i32) -> (i32, i32) {
    %c0_i32 = arith.constant 0 : i32
    %c0_i32_0 = arith.constant 0 : i32
    %c0_i32_1 = arith.constant 0 : i32
    return %c0_i32, %c0_i32_0 : i32, i32
  }
  func.func @transform_3(%arg0: i32, %arg1: i32) -> (i32, i32, i32) {
    %c0_i32 = arith.constant 0 : i32
    %c0_i32_0 = arith.constant 0 : i32
    return %arg0, %c0_i32, %arg1 : i32, i32, i32
  }
}

</mosaic_0001>

<bundles_post_ra>
// kernel: tpu_custom_call.1
= control target key start
LH: loop header
LB: loop body
LE: loop exit
PB: predicated region body
PF: predicated region fallthrough
CT: control target
= control target key end

     0   :  { %8 = vsyncpa [#allocation3], 0  ;;  %s945_s0 = inlined_call_operand.hbm [shape: f32[2,32,256], index: 0, kind: input, shape index: {}]   ;;  %s946_s1 = inlined_call_operand.hbm [shape: f32[4,32], index: 1, kind: input, shape index: {}]   ;;  %s947_s2 = inlined_call_operand.vmem [shape: f32[3,4], index: 2, kind: input, shape index: {}]   ;;  %s948_s3 = inlined_call_operand.vmem [shape: f32[2,3,256], index: 3, kind: output, shape index: {}]  }
   0x1   :  { %10 = vsyncpa [#allocation3 + $0x1], 0 }
   0x2   :  { %11 = vsyncpa [#allocation5], 0  ;;  %s772_s12 = smov 0   ;;  %s774_s13 = smov 0  }
   0x3   :  { %s776_s14 = smov 0   ;;  %s778_s15 = smov 0  }
   0x4   :  { %s780_s16 = smov 0   ;;  %s782_s17 = smov 0  }
   0x5 LB: > { %s525_s18 = sadd.s32 4294967295, %s745_s17   ;;  %s38_s19 = sadd.s32 1, %s733_s14  ;;  %s745_s17 = sphi %s782_s17, %s17_s17   ;;  %s741_s16 = sphi %s780_s16, %s968_s16   ;;  %s737_s15 = sphi %s778_s15, %s967_s15   ;;  %s733_s14 = sphi %s776_s14, %s966_s14   ;;  %s729_s13 = sphi %s774_s13, %s965_s13   ;;  %s725_s12 = sphi %s772_s12, %s964_s12  }
   0x6   : > { %p45_p0 = scmp.ne.s32.totalorder %s733_s14, %s729_s13  ;;  %p46_p1 = scmp.eq.s32.totalorder %s745_s17, 0 }
   0x7   : > { %p51_p2 = scmp.ne.s32.totalorder %s729_s13, %s725_s12  ;;  %p806_p3 = scmp.eq.s32.totalorder %s525_s18, 0 }
   0x8   : > { %p47_p4 = por %p46_p1, %p45_p0  ;;  %p527_p5 = scmp.ge.s32.totalorder %s745_s17, 1 }
   0x9   : > { %s954_s20 = scalar_select %p806_p3, 1, 0 }
   0xa   : > { %p813_p6 = por %p806_p3, %p51_p2  ;;  %p132_p7 = scmp.lt.s32.totalorder %s745_s17, 3 }
   0xb   : > { %s747_s23 = smov [#allocation4]   ;;  %p571_p10 = scmp.lt.s32.totalorder %s745_s17, 2 }
   0xc   : > { %s955_s21 = scalar_select %p813_p6, 1, 0 }
   0xd   : > { %p818_p8 = pnand %p527_p5, %p132_p7  ;;  %s145_s24 = sshll.u32 %s747_s23, 4  ;;  %s146_s24 = int_to_ptr.vmem [resolvable:$true] %s145_s24 }
   0xe   : > { %s159_s25 = sand.u32 1, %s733_s14   ;;  %p832_p12 = pnand %p571_p10, %p47_p4 }
   0xf   : > { %s956_s22 = scalar_select %p818_p8, 1, 0 }
  0x10   : > { %p562_p9 = pneg %p818_p8  ;;  %s633_s30 = scalar_lea.hbm %s946_s1, 64 }
  0x11   : > { %s958_s27 = scalar_select %p832_p12, 1, 0 }
  0x12   : > { %p828_p11 = pnand %p562_p9, %p806_p3  ;;  %p634_p13 = scmp.ne.s32.totalorder %s946_s1, %s633_s30 }
  0x13   : > { %p640_p5 = scmp.lt.u32.totalorder %s633_s30, %s946_s1 }
  0x14   : > { %p635_p0 = pneg %p828_p11 }
  0x16   : > { %p636_p1 = pnand %p635_p0, %p634_p13 }
  0x18   : > { %p637_p2 = pneg %p636_p1 }
  0x1a   : > { %p642_p4 = pnand %p640_p5, %p637_p2 }
  0x1c   : > { %645 = shalt.err (!%p642_p4)
}
  0x1d   : > { %s646_s8 = scalar_lea.vmem %s146_s24, 64  ;;  %p654_p3 = scmp.lt.s32.totalorder %s146_s24, %s146_s24 }
  0x1e   : > { %p647_p7 = scmp.ne.s32.totalorder %s146_s24, %s646_s8  ;;  %p655_p6 = scmp.lt.s32.totalorder %s646_s8, %s646_s8 }
  0x20   : > { %p649_p9 = pnand %p647_p7, %p635_p0  ;;  %p656_p8 = por %p655_p6, %p654_p3 }
  0x22   : > { %p650_p10 = pneg %p649_p9 }
  0x24   : > { %p657_p12 = pnand %p656_p8, %p650_p10 }
  0x26   : > { %660 = shalt.err (!%p657_p12)
}
  0x27   : > { %565 = dma.hbm_to_vmem [thread:$0]  (!%p828_p11), %s946_s1, 64, %s146_s24, [#allocation5]  }
  0x28   : > { %s29_s11 = sadd.s32 1, %s741_s16  ;;  %s530_s12 = sshll.u32 %s159_s25, 6 }
  0x29   : > { %p31_p13 = scmp.ge.s32.totalorder %s29_s11, 2  ;;  %s546_s18 = sshll.u32 %s741_s16, 10 }
  0x2a   : > { %s163_s23 = scalar_lea.vmem [#allocation2], %s530_s12  ;;  %s861_s30 = scalar_lea.hbm %s945_s0, %s546_s18 }
  0x2b   : > { %s172_s28 = sshll.u32 %s163_s23, 4  ;;  %s970_s11 = smov (%p31_p13, %s29_s11), 0  ;;  %s863_s28 = int_to_ptr.vmem [resolvable:$true] %s172_s28 }
  0x2c   : > { %s33_s24 = ssub.s32 %s741_s16, %s970_s11  ;;  %s873_s5 = scalar_lea.sflag [#allocation3], %s159_s25 }
  0x2d   : > { %p867_p3 = scmp.eq.s32.totalorder %s33_s24, 0  ;;  %s661_s6 = scalar_lea.hbm %s861_s30, 1024 }
  0x2e   : > { %p662_p6 = scmp.ne.s32.totalorder %s861_s30, %s661_s6  ;;  %p960_p8 = scmp.ne.s32.totalorder %s958_s27, 0 }
  0x2f   : > { %s666_s9 = scalar_lea.hbm %s945_s0, 2048  ;;  %p667_p1 = scmp.lt.u32.totalorder %s861_s30, %s945_s0 }
  0x30   : > { %p663_p11 = pneg %p960_p8  ;;  %p668_p2 = scmp.lt.u32.totalorder %s666_s9, %s661_s6 }
  0x31   : > { %p670_p4 = scmp.lt.u32.totalorder %s661_s6, %s861_s30 }
  0x32   : > { %p664_p12 = pnand %p663_p11, %p662_p6  ;;  %p669_p5 = por %p668_p2, %p667_p1 }
  0x34   : > { %p665_p0 = pneg %p664_p12  ;;  %p671_p7 = por %p670_p4, %p669_p5 }
  0x36   : > { %p672_p9 = pnand %p671_p7, %p665_p0 }
  0x38   : > { %675 = shalt.err (!%p672_p9)
}
  0x39   : > { %s676_s25 = scalar_lea.vmem %s863_s28, 1024  ;;  %s748_s18 = smov [#allocation2]  }
  0x3a   : > { %p677_p10 = scmp.ne.s32.totalorder %s863_s28, %s676_s25  ;;  %s681_s23 = sshll.u32 %s748_s18, 4  ;;  %s682_s23 = int_to_ptr.vmem [resolvable:$false] %s681_s23 }
  0x3b   : > { %s683_s26 = scalar_lea.vmem %s682_s23, 2048  ;;  %p684_p12 = scmp.lt.s32.totalorder %s863_s28, %s682_s23 }
  0x3c   : > { %p679_p13 = pnand %p677_p10, %p663_p11  ;;  %p685_p1 = scmp.lt.s32.totalorder %s683_s26, %s676_s25 }
  0x3e   : > { %p680_p6 = pneg %p679_p13  ;;  %p686_p2 = por %p685_p1, %p684_p12 }
  0x40   : > { %p687_p5 = pnand %p686_p2, %p680_p6 }
  0x42   : > { %690 = shalt.err (!%p687_p5)
}
  0x43   : > { %s749_s29 = smov 256   ;;  %s750_s24 = smov 16  }
  0x44   : > { %569 = dma.hbm_to_vmem [thread:$0]  (!%p960_p8), %s861_s30, 1024, %s863_s28, %s873_s5, %s749_s29, %s749_s29, %s750_s24  }
  0x45   : > { %s906_s6 = scalar_select %p867_p3, %s733_s14, %s38_s19  }
  0x46   : > { %p961_p11 = scmp.ne.s32.totalorder %s956_s22, 0 }
  0x47   : > { %s186_s7 = sand.u32 (!%p961_p11), 1, %s729_s13   ;;  %p962_p0 = scmp.ne.s32.totalorder (!%p961_p11), %s955_s21, 0 }
  0x48   : > { %184 = sbr.rel (%p961_p11) target bundleno = 555 (0x22b), region = 32  ;;  %s534_s8 = sshll.u32 (!%p961_p11), %s186_s7, 6 }
  0x49   : > { %s187_s9 = scalar_lea.sflag (!%p961_p11), [#allocation3], %s186_s7  ;;  %s190_s10 = scalar_lea.vmem (!%p961_p11), [#allocation2], %s534_s8 }
  0x4f   : > { %716 = dma.done.wait (%p962_p0), %s187_s9, 1024  }
  0x50   : > { %718 = vsyncadd (%p962_p0), %s187_s9, 4294966272  ;;  %p963_p8 = scmp.ne.s32.totalorder %s954_s20, 0 }
  0x52   : > { %720 = dma.done.wait (%p963_p8), [#allocation5], 64  }
  0x53   : > { %722 = vsyncadd (%p963_p8), [#allocation5], 4294967232  ;;  %v751_v0 = vmov 0.0   ;;  %v234_v1 = vld [vmem:[%s190_s10 + $0x8] sm:$0xff]  ;;  %v236_v2 = vld [vmem:[%s190_s10 + $0x18] sm:$0xff]  ;;  %vm241_vm0 = vcmask 261120  }
  0x54   : > { %309 = vmatprep.mubr.f32.mxu0 %v751_v0  ;;  %394 = vmatprep.mubr.f32.mxu1 %v751_v0  ;;  %v233_v3 = vld [vmem:[%s190_s10] sm:$0xff]  ;;  %v548_v4 = vpack.c.bf16 %v236_v2, %v234_v1  ;;  %v235_v5 = vld [vmem:[%s190_s10 + $0x10] sm:$0xff]  ;;  %v238_v6 = vld [vmem:[%s190_s10 + $0x28] sm:$0xff]  ;;  %vm323_vm1 = vcmask 1043456   ;;  %vm319_vm2 = vcmask 31744   ;;  %p223_p3 = scmp.lt.s32.totalorder %s737_s15, 1 }
  0x55   : > { %v240_v7 = vld [vmem:[%s190_s10 + $0x38] sm:$0xff]  ;;  %v550_v8 = vpack.c.bf16 %v235_v5, %v233_v3  ;;  %v237_v10 = vld [vmem:[%s190_s10 + $0x20] sm:$0xff]  ;;  %v239_v11 = vld [vmem:[%s190_s10 + $0x30] sm:$0xff] }
  0x56   : > { %v552_v9 = vpack.c.bf16 %v240_v7, %v238_v6  ;;  %549 = vmatprep.subr.bf16.mxu0 %v548_v4  ;;  %v554_v12 = vpack.c.bf16 %v239_v11, %v237_v10  ;;  %v232_v13 = vld [vmem:[#allocation4] sm:$0xf]  ;;  %s972_s15 = smov (!%p223_p3, %s737_s15), 1 }
  0x57   : > { %551 = vmatpush1.bf16.msra.mxu0 %v550_v8  ;;  %v318_v18 = vld [vmem:[%s947_s2] sm:$0x7]  ;;  %s547_s21 = sshll.u32 %s972_s15, 3 }
  0x58   : > { %553 = vmatprep.subr.bf16.mxu0 %v552_v9  ;;  %s230_s28 = scalar_lea.vmem %s948_s3, %s547_s21 }
  0x5b   : > { %555 = vmatpush1.bf16.msra.mxu0 %v554_v12 }
  0x5e   : > { %538 = vmatmul.mubr.msk.f32.vlgmr.msra.gmra.mrb[0].mxu0 %vm241_vm0, %v232_v13 }
 0x131   : > { %v311_v14 = vpop.f32.mrb[0].mxu0 }
 0x132   : > { %v313_v15 = vpop.f32.mrb[1].mxu0  ;;  %v316_v17 = vmax.f32 %v311_v14, 0.0 }
 0x133   : > { %v317_v16 = vmax.f32 %v313_v15, 0.0 }
 0x135   : > { %539 = vmatprep.subr.msk.mxu1 %vm323_vm1, %v317_v16 }
 0x136   : > { %540 = vmatpush1.msk.msra.mxu1 %vm323_vm1, %v316_v17 }
 0x137   : > { %541 = vmatmul.mubr.msk.f32.vlgmr.msra.gmra.mrb[0].mxu1 %vm319_vm2, %v318_v18 }
 0x20a   : > { %v396_v19 = vpop.f32.mrb[0].mxu1 }
 0x20b   : > { %v542_v20 = vmul.f32 -1.442695, %v396_v19  ;;  %v398_v21 = vpop.f32.mrb[1].mxu1 }
 0x20c   : > { %v543_v22 = vmul.f32 -1.442695, %v398_v21 }
 0x20d   : > { %625 = vpow2.f32 %v542_v20 }
 0x20e   : > { %627 = vpow2.f32 %v543_v22 }
 0x217   : > { %v626_v23 = vpop.eup %625 }
 0x218   : > { %v628_v24 = vpop.eup %627  ;;  %v407_v25 = vadd.f32 1.0, %v626_v23 }
 0x219   : > { %v408_v26 = vadd.f32 1.0, %v628_v24 }
 0x21a   : > { %629 = vrcp.f32 %v407_v25 }
 0x21b   : > { %631 = vrcp.f32 %v408_v26 }
 0x224   : > { %v630_v27 = vpop.eup %629 }
 0x225   : > { %v632_v28 = vpop.eup %631  ;;  %v413_v29 = vmul.f32 2.0, %v630_v27 }
 0x226   : > { %v414_v30 = vmul.f32 2.0, %v632_v28 }
 0x228   : > { %v417_v31 = vcombine.low %v413_v29, %v414_v30 }
 0x22a   : > { %419 = vst [vmem:[%s230_s28] sm:$0x77] %v417_v31 }
 0x22b PF: > { %s17_s17 = sadd.s32 1, %s745_s17   ;;  %s964_s12 = smov %s729_s13 }
 0x22c   : > { %p14_p4 = scmp.ge.s32.totalorder %s17_s17, 4   ;;  %s965_s13 = smov %s733_s14 }
 0x22d   : > { %s966_s14 = smov %s906_s6  ;;  %s967_s15 = smov %s741_s16 }
 0x22e   : > { %s968_s16 = smov %s970_s11  ;;  %16 = sbr.rel (!%p14_p4) target bundleno = 5 (0x5), region = 76 }
 0x235   :  { %450 = vsyncpa [#allocation3], 1 }
 0x236   :  { %452 = vsyncpa [#allocation3 + $0x1], 1 }
 0x237   :  { %453 = vsyncpa [#allocation5], 1 }

</bundles_post_ra>
